<compile_context>
chip_gen: v7x
topology: tpu7x:2x2x1
jax: 0.10.0
libtpu: 0.0.40
codegen_flags: <defaults>
</compile_context>

<pallas_src>
import functools

import jax
import jax.numpy as jnp
from jax import lax
from jax.experimental import pallas as pl
from jax.experimental.pallas import tpu as pltpu

_LANES = 128
_ROW_GRANULE = 32          # row granularity: int8 targets need (32,128) tiles
_SUB_ROWS = 512            # rows per inner compute chunk (bounds VMEM temporaries)


def _round_up(x, m):
    return ((x + m - 1) // m) * m


def _round_down(x, m):
    return (x // m) * m


def _cdiv(a, b):
    return -(-a // b)


def _default_num_parallel():
    # Two TensorCores share the grid only on v7x; v5e/v6e have a single TC, so
    # a size-2 "parallel" axis there is just 2x the serial grid steps.
    try:
        kind = jax.devices()[0].device_kind.lower()
    except Exception:
        return 1
    return 2 if "7" in kind else 1


def _ce_fpr_kernel(logits_ref, targets_ref, weight_ref, out_ref, *,
                   num_classes, label_smoothing, batch_size,
                   block_rows, sub_rows, blocks_per_core):
    i = pl.program_id(0)              # core ("parallel") axis
    j = pl.program_id(1)              # batch-block ("arbitrary") axis
    C = num_classes
    ls = float(label_smoothing)
    R, S = block_rows, sub_rows
    n_sub = R // S

    @pl.when(j == 0)
    def _init():
        out_ref[...] = jnp.zeros_like(out_ref)

    # Per-class weights live in SMEM; read the scalars once per grid step.
    w = [weight_ref[k] for k in range(C)]

    # First logical row-of-128 of this block (may be past the real array when
    # the last core's tail blocks were clamped in the index_map; the validity
    # mask below then zeroes every contribution).
    block_row0 = (i * blocks_per_core + j) * R

    def sub_chunk(s, carry):
        row0 = s * S
        if not isinstance(row0, int):
            row0 = pl.multiple_of(row0, S)

        rr = lax.broadcasted_iota(jnp.int32, (S, _LANES), 0)
        lane = lax.broadcasted_iota(jnp.int32, (S, _LANES), 1)
        valid = ((block_row0 + row0 + rr) * _LANES + lane) < batch_size
        validf = valid.astype(jnp.float32)

        tgt = targets_ref[pl.ds(row0, S), :].astype(jnp.int32)        # (S,128)

        if C == 2:
            ce_slab, t1_slab = carry
            l0 = logits_ref[0, pl.ds(row0, S), :].astype(jnp.float32)
            l1 = logits_ref[1, pl.ds(row0, S), :].astype(jnp.float32)
            # Guard BEFORE the transcendentals: tail lanes may hold garbage.
            d = jnp.where(valid, l1 - l0, 0.0)
            t1 = jnp.where(valid, (tgt == 1).astype(jnp.float32), 0.0)
            # Pairwise binary log-softmax: one exp + one log per sample, no
            # cross-class reduce.  (jnp.log(1+x): guaranteed Mosaic lowering.)
            log1pexp = jnp.log(1.0 + jnp.exp(-jnp.abs(d)))
            logp1 = jnp.minimum(d, 0.0) - log1pexp
            logp0 = jnp.minimum(-d, 0.0) - log1pexp
            sm1 = (1.0 - ls) * t1 + 0.5 * ls
            sm0 = (1.0 - ls) * (1.0 - t1) + 0.5 * ls
            ce = -(sm0 * logp0 * w[0] + sm1 * logp1 * w[1]) * validf
            # (S,128) -> (S/8,8,128) is layout-preserving; leading-axis sum is
            # pure VPU adds into an (8,128) slab (no XLU cross-lane reduce).
            ce_slab = ce_slab + ce.reshape(S // 8, 8, _LANES).sum(axis=0)
            t1_slab = t1_slab + t1.reshape(S // 8, 8, _LANES).sum(axis=0)
            return (ce_slab, t1_slab)
        else:
            ce_slab = carry[0]
            cnt_slabs = list(carry[1:])
            lg = [jnp.where(valid,
                            logits_ref[k, pl.ds(row0, S), :].astype(jnp.float32),
                            0.0)
                  for k in range(C)]
            m = lg[0]
            for k in range(1, C):
                m = jnp.maximum(m, lg[k])
            se = jnp.exp(lg[0] - m)
            for k in range(1, C):
                se = se + jnp.exp(lg[k] - m)
            logz = m + jnp.log(se)
            ce = jnp.zeros((S, _LANES), jnp.float32)
            for k in range(C):
                onehot_k = jnp.where(valid, (tgt == k).astype(jnp.float32), 0.0)
                sm_k = (1.0 - ls) * onehot_k + (ls / C)
                ce = ce + sm_k * (lg[k] - logz) * w[k]
                cnt_slabs[k] = cnt_slabs[k] + onehot_k.reshape(
                    S // 8, 8, _LANES).sum(axis=0)
            ce_slab = ce_slab + ((-ce) * validf).reshape(
                S // 8, 8, _LANES).sum(axis=0)
            return (ce_slab,) + tuple(cnt_slabs)

    n_carry = 2 if C == 2 else 1 + C
    init = (jnp.zeros((8, _LANES), jnp.float32),) * n_carry
    if n_sub == 1:
        slabs = sub_chunk(0, init)
    else:
        slabs = lax.fori_loop(0, n_sub, sub_chunk, init)

    for r in range(n_carry):
        out_ref[r] += slabs[r]


def cross_entropy_fpr_loss(logits, targets, weight=None, *, alpha=0.5,
                           recall_threshold=0.95, num_classes=2,
                           label_smoothing=0.1, block_rows=None,
                           num_parallel=None,
                           target_block_bytes=4 * 1024 * 1024):
    """JAX/Pallas equivalent of CrossEntropyFPRLoss.forward."""
    alpha = float(min(max(float(alpha), 0.1), 1.0))   # torch.clamp(alpha, .1, 1)
    B, C = logits.shape
    assert C == num_classes
    ls = float(label_smoothing)
    # class_targets = (smoothed_onehot > 0.5) must coincide with the plain
    # one-hot for the count-based FPR below to mirror the torch code.
    if not ((1.0 - ls) + ls / C > 0.5 and ls / C < 0.5):
        raise ValueError("label_smoothing too large for (smoothed > 0.5) semantics")

    if weight is None:
        weight_arr = jnp.ones((C,), jnp.float32)
    else:
        weight_arr = jnp.asarray(weight, jnp.float32).reshape(C)

    if num_parallel is None:
        num_parallel = _default_num_parallel()

    # ---- relayout: (B, C) -> (C, nrows, 128), targets -> (nrows, 128) int8 ---
    # Single pad+reshape+transpose; XLA fuses these into one copy.
    # TODO(synk): emit logits in (C, nrows, 128) upstream (or use
    # CompilerParams(allow_input_fusion)) to avoid even this one relayout pass.
    granule = _ROW_GRANULE * _LANES
    Bp = _round_up(B, granule)
    nrows = Bp // _LANES
    pad = Bp - B
    logits_p = jnp.pad(logits, ((0, pad), (0, 0))) if pad else logits
    targets_p = jnp.pad(targets, ((0, pad),)) if pad else targets
    logits_r = logits_p.reshape(nrows, _LANES, C).transpose(2, 0, 1)  # (C,nrows,128)
    targets_r = targets_p.reshape(nrows, _LANES).astype(jnp.int8)

    num_parallel = max(1, min(int(num_parallel), nrows // _ROW_GRANULE))

    # ---- block-size selection: ~target_block_bytes of input per grid step ----
    itemsize = jnp.dtype(logits.dtype).itemsize
    bytes_per_row = C * _LANES * itemsize + _LANES            # logits + int8 tgt
    r_cap = _round_up(_cdiv(nrows, num_parallel), _ROW_GRANULE)
    if block_rows is None:
        R = _round_down(max(_ROW_GRANULE, target_block_bytes // bytes_per_row),
                        _ROW_GRANULE)
    else:
        R = _round_up(int(block_rows), _ROW_GRANULE)
    R = max(_ROW_GRANULE, min(R, r_cap))
    if R > _SUB_ROWS:                         # inner compute chunking
        R = _round_down(R, _SUB_ROWS)
        sub = _SUB_ROWS
    else:
        sub = R

    nbt = _cdiv(nrows, R)                     # real row blocks
    nb = _cdiv(nbt, num_parallel)             # blocks per core (grid extent)
    last_block = nbt - 1

    OUTR = 2 if C == 2 else 1 + C

    kernel = functools.partial(
        _ce_fpr_kernel, num_classes=C, label_smoothing=ls, batch_size=B,
        block_rows=R, sub_rows=sub, blocks_per_core=nb)

    # Clamp to the last real block so no DMA ever starts fully out of bounds;
    # the in-kernel validity mask zeroes contributions of clamped duplicates.
    def _logits_map(i, j):
        return (0, jnp.minimum(i * nb + j, last_block), 0)

    def _targets_map(i, j):
        return (jnp.minimum(i * nb + j, last_block), 0)

    cost = pl.CostEstimate(
        flops=25 * B * C,
        transcendentals=(2 * B) if C == 2 else ((C + 1) * B),
        bytes_accessed=Bp * C * itemsize + Bp
                       + num_parallel * OUTR * 8 * _LANES * 4)

    partials = pl.pallas_call(
        kernel,
        out_shape=jax.ShapeDtypeStruct((num_parallel, OUTR, 8, _LANES),
                                       jnp.float32),
        grid_spec=pltpu.PrefetchScalarGridSpec(
            num_scalar_prefetch=0,
            grid=(num_parallel, nb),
            in_specs=[
                pl.BlockSpec((C, R, _LANES), _logits_map),
                pl.BlockSpec((R, _LANES), _targets_map),
                pl.BlockSpec(memory_space=pltpu.MemorySpace.SMEM),
            ],
            out_specs=pl.BlockSpec((None, OUTR, 8, _LANES),
                                   lambda i, j: (i, 0, 0, 0)),
        ),
        compiler_params=pltpu.CompilerParams(
            dimension_semantics=("parallel", "arbitrary"),
            vmem_limit_bytes=32 * 1024 * 1024),
        cost_estimate=cost,
    )(logits_r, targets_r, weight_arr)

    # ---- tiny scalar epilogue: combine slabs, recall/FPR gate, exp -----------
    bsz = jnp.float32(B)
    ce_loss = jnp.sum(partials[:, 0]) / bsz
    if C == 2:
        tp1 = jnp.sum(partials[:, 1])
        tp = jnp.stack([bsz - tp1, tp1])
    else:
        tp = jnp.sum(partials[:, 1:1 + C], axis=(0, 2, 3))
    fp = bsz - tp
    recall = tp / bsz                          # tp + fp == B > 0 always
    fpr = jnp.where(recall >= recall_threshold, fp / bsz, 0.0)
    avg_fpr = fpr[1] if C == 2 else jnp.mean(fpr)
    return ce_loss + (jnp.exp(alpha * avg_fpr) - 1.0)


def _reference(logits, targets, weight, *, alpha, recall_threshold,
               num_classes, label_smoothing):
    """Pure-JAX reference mirroring the PyTorch module."""
    alpha = float(min(max(float(alpha), 0.1), 1.0))
    logits = logits.astype(jnp.float32)
    onehot = jnp.eye(num_classes, dtype=jnp.float32)[targets]
    if label_smoothing > 0:
        onehot = (1 - label_smoothing) * onehot + label_smoothing / num_classes
    log_probs = jax.nn.log_softmax(logits, axis=1)
    ce = -(onehot * log_probs * weight).sum(axis=1).mean()

    def fpr_for_class(i):
        ct = (onehot[:, i] > 0.5).astype(jnp.float32)
        tp = jnp.sum(ct)
        fp = jnp.sum(1 - ct)
        recall = jnp.where(tp + fp > 0, tp / (tp + fp), 0.0)
        fpr = jnp.where(tp + fp > 0, fp / (fp + tp), 0.0)
        return jnp.where(recall >= recall_threshold, fpr, 0.0)

    if num_classes == 2:
        avg_fpr = fpr_for_class(1)
    else:
        avg_fpr = jnp.mean(jnp.stack([fpr_for_class(i)
                                      for i in range(num_classes)]))
    return ce + (jnp.exp(alpha * avg_fpr) - 1.0)


def _check(name, logits, targets, weight, *, alpha, recall_threshold,
           num_classes, label_smoothing, **kernel_kw):
    loss = jax.block_until_ready(
        cross_entropy_fpr_loss(logits, targets, weight, alpha=alpha,
                               recall_threshold=recall_threshold,
                               num_classes=num_classes,
                               label_smoothing=label_smoothing, **kernel_kw))
    w = (jnp.ones((num_classes,), jnp.float32) if weight is None
         else jnp.asarray(weight, jnp.float32))
    ref = _reference(logits, targets, w, alpha=alpha,
                     recall_threshold=recall_threshold,
                     num_classes=num_classes, label_smoothing=label_smoothing)
    if not jnp.allclose(loss, ref, atol=2e-5, rtol=5e-4):
        raise AssertionError(f"{name}: kernel={loss} ref={ref}")


if __name__ == "__main__":
    key = jax.random.PRNGKey(0)
    k1, k2, k3, k4, k5, k6, k7, k8 = jax.random.split(key, 8)

    # 1) binary, f32, module defaults (small batch)
    B, C = 8, 2
    logits = jax.random.normal(k1, (B, C), dtype=jnp.float32)
    targets = jax.random.randint(k2, (B,), 0, C, dtype=jnp.int32)
    _check("binary_f32", logits, targets, None,
           alpha=0.5, recall_threshold=0.95, num_classes=C, label_smoothing=0.1)

    # 2) binary, bf16 logits (native dtype in the kernel), low threshold so the
    #    non-zero FPR branch is exercised
    _check("binary_bf16", logits.astype(jnp.bfloat16), targets,
           jnp.ones((C,), jnp.float32),
           alpha=0.5, recall_threshold=0.25, num_classes=C, label_smoothing=0.1)

    # 3) multi-class, non-uniform class weights
    B2, C2 = 600, 4
    logits2 = jax.random.normal(k3, (B2, C2), dtype=jnp.float32)
    targets2 = jax.random.randint(k4, (B2,), 0, C2, dtype=jnp.int32)
    w2 = jnp.array([1.0, 2.0, 0.5, 1.5], dtype=jnp.float32)
    _check("multiclass_f32", logits2, targets2, w2,
           alpha=0.7, recall_threshold=0.95, num_classes=C2,
           label_smoothing=0.05)

    # 4) binary, bf16, batch not a multiple of 128, forced multi-block tiling
    B3, C3 = 9000, 2
    logits3 = jax.random.normal(k5, (B3, C3), dtype=jnp.bfloat16)
    targets3 = jax.random.randint(k6, (B3,), 0, C3, dtype=jnp.int32)
    _check("binary_bf16_tiled", logits3, targets3, None,
           alpha=0.5, recall_threshold=0.25, num_classes=C3,
           label_smoothing=0.1, block_rows=32)

    # 5) binary, f32, larger batch: exercises the inner sub-chunk loop
    #    (n_sub > 1), multiple pipelined blocks and the ragged tail mask.
    B4, C4 = 200_000, 2
    logits4 = jax.random.normal(k7, (B4, C4), dtype=jnp.float32)
    targets4 = jax.random.randint(k8, (B4,), 0, C4, dtype=jnp.int32)
    _check("binary_f32_large", logits4, targets4, None,
           alpha=0.5, recall_threshold=0.25, num_classes=C4,
           label_smoothing=0.1, block_rows=1536, num_parallel=1)

    print("KERNEL_OK")
</pallas_src>

<mosaic_0001>
module attributes {stable_mosaic.version = 11 : i64} {
  func.func @_ce_fpr_kernel(%arg0: i32, %arg1: i32, %arg2: memref<2x32x128xf32, #tpu.memory_space<vmem>>, %arg3: memref<32x128xi8, #tpu.memory_space<vmem>>, %arg4: memref<2xf32, #tpu.memory_space<smem>>, %arg5: memref<1x2x8x128xf32, #tpu.memory_space<vmem>>) attributes {dimension_semantics = [#tpu.dimension_semantics<parallel>, #tpu.dimension_semantics<arbitrary>], iteration_bounds = array<i64: 1, 1>, scalar_prefetch = 0 : i64, scratch_operands = 0 : i64, tpu.core_type = #tpu.core_type<tc>, window_params = [{transform_indices = @transform_0, window_bounds = array<i64: 2, 32, 128>}, {transform_indices = @transform_1, window_bounds = array<i64: 32, 128>}, {transform_indices = @transform_2, window_bounds = array<i64: 2>}, {transform_indices = @transform_3, window_bounds = array<i64: 1, 2, 8, 128>}]} {
    %c0_i32 = arith.constant 0 : i32
    %0 = arith.cmpi eq, %arg1, %c0_i32 : i32
    %1 = arith.extui %0 : i1 to i32
    %c0_i32_0 = arith.constant 0 : i32
    %2 = arith.cmpi ne, %1, %c0_i32_0 : i32
    scf.if %2 {
      %cst_42 = arith.constant 0.000000e+00 : f32
      %89 = vector.broadcast %cst_42 : f32 to vector<2x8x128xf32>
      %c0_43 = arith.constant 0 : index
      %c0_44 = arith.constant 0 : index
      %c0_45 = arith.constant 0 : index
      %c0_46 = arith.constant 0 : index
      %90 = vector.load %arg5[%c0_43, %c0_44, %c0_45, %c0_46] : memref<1x2x8x128xf32, #tpu.memory_space<vmem>>, vector<1x2x8x128xf32>
      %91 = vector.shape_cast %90 : vector<1x2x8x128xf32> to vector<2x8x128xf32>
      %92 = vector.shape_cast %89 : vector<2x8x128xf32> to vector<1x2x8x128xf32>
      tpu.vector_store %arg5[%c0_43, %c0_44, %c0_45, %c0_46], %92 {strides = array<i32>} : memref<1x2x8x128xf32, #tpu.memory_space<vmem>>, vector<1x2x8x128xf32>,
    } else {
    }
    %c0 = arith.constant 0 : index
    %3 = memref.load %arg4[%c0] : memref<2xf32, #tpu.memory_space<smem>>
    %c1 = arith.constant 1 : index
    %4 = memref.load %arg4[%c1] : memref<2xf32, #tpu.memory_space<smem>>
    %c1_i32 = arith.constant 1 : i32
    %5 = arith.muli %arg0, %c1_i32 : i32
    %6 = arith.addi %5, %arg1 : i32
    %c32_i32 = arith.constant 32 : i32
    %7 = arith.muli %6, %c32_i32 : i32
    %cst = arith.constant 0.000000e+00 : f32
    %8 = vector.broadcast %cst : f32 to vector<8x128xf32>
    %9 = tpu.iota {dimensions = array<i32: 0>} : vector<32x128xi32>
    %10 = tpu.iota {dimensions = array<i32: 1>} : vector<32x128xi32>
    %c0_i32_1 = arith.constant 0 : i32
    %11 = arith.addi %7, %c0_i32_1 : i32
    %12 = vector.broadcast %11 : i32 to vector<32x128xi32>
    %13 = arith.addi %12, %9 : vector<32x128xi32>
    %c128_i32 = arith.constant 128 : i32
    %14 = vector.broadcast %c128_i32 : i32 to vector<32x128xi32>
    %15 = arith.muli %13, %14 : vector<32x128xi32>
    %16 = arith.addi %15, %10 : vector<32x128xi32>
    %c8_i32 = arith.constant 8 : i32
    %17 = vector.broadcast %c8_i32 : i32 to vector<32x128xi32>
    %18 = arith.cmpi slt, %16, %17 : vector<32x128xi32>
    %19 = arith.extui %18 : vector<32x128xi1> to vector<32x128xi32>
    %20 = arith.sitofp %19 : vector<32x128xi32> to vector<32x128xf32>
    %c0_2 = arith.constant 0 : index
    %c0_3 = arith.constant 0 : index
    %21 = vector.load %arg3[%c0_2, %c0_3] : memref<32x128xi8, #tpu.memory_space<vmem>>, vector<32x128xi8>
    %22 = arith.extsi %21 : vector<32x128xi8> to vector<32x128xi32>
    %c0_4 = arith.constant 0 : index
    %c0_5 = arith.constant 0 : index
    %c0_6 = arith.constant 0 : index
    %23 = vector.load %arg2[%c0_4, %c0_5, %c0_6] : memref<2x32x128xf32, #tpu.memory_space<vmem>>, vector<1x32x128xf32>
    %24 = vector.shape_cast %23 : vector<1x32x128xf32> to vector<32x128xf32>
    %c1_7 = arith.constant 1 : index
    %c0_8 = arith.constant 0 : index
    %c0_9 = arith.constant 0 : index
    %25 = vector.load %arg2[%c1_7, %c0_8, %c0_9] : memref<2x32x128xf32, #tpu.memory_space<vmem>>, vector<1x32x128xf32>
    %26 = vector.shape_cast %25 : vector<1x32x128xf32> to vector<32x128xf32>
    %27 = arith.subf %26, %24 : vector<32x128xf32>
    %cst_10 = arith.constant 0.000000e+00 : f32
    %28 = vector.broadcast %cst_10 : f32 to vector<32x128xf32>
    %29 = arith.select %18, %27, %28 : vector<32x128xi1>, vector<32x128xf32>
    %c1_i32_11 = arith.constant 1 : i32
    %30 = vector.broadcast %c1_i32_11 : i32 to vector<32x128xi32>
    %31 = arith.cmpi eq, %22, %30 : vector<32x128xi32>
    %32 = arith.extui %31 : vector<32x128xi1> to vector<32x128xi32>
    %33 = arith.sitofp %32 : vector<32x128xi32> to vector<32x128xf32>
    %cst_12 = arith.constant 0.000000e+00 : f32
    %34 = vector.broadcast %cst_12 : f32 to vector<32x128xf32>
    %35 = arith.select %18, %33, %34 : vector<32x128xi1>, vector<32x128xf32>
    %36 = math.absf %29 : vector<32x128xf32>
    %cst_13 = arith.constant 0.000000e+00 : f32
    %37 = vector.broadcast %cst_13 : f32 to vector<32x128xf32>
    %38 = arith.subf %37, %36 : vector<32x128xf32>
    %39 = math.exp %38 : vector<32x128xf32>
    %cst_14 = arith.constant 1.000000e+00 : f32
    %40 = vector.broadcast %cst_14 : f32 to vector<32x128xf32>
    %41 = arith.addf %40, %39 : vector<32x128xf32>
    %42 = math.log %41 : vector<32x128xf32>
    %cst_15 = arith.constant 0.000000e+00 : f32
    %43 = vector.broadcast %cst_15 : f32 to vector<32x128xf32>
    %44 = arith.minimumf %29, %43 : vector<32x128xf32>
    %45 = arith.subf %44, %42 : vector<32x128xf32>
    %cst_16 = arith.constant 0.000000e+00 : f32
    %46 = vector.broadcast %cst_16 : f32 to vector<32x128xf32>
    %47 = arith.subf %46, %29 : vector<32x128xf32>
    %cst_17 = arith.constant 0.000000e+00 : f32
    %48 = vector.broadcast %cst_17 : f32 to vector<32x128xf32>
    %49 = arith.minimumf %47, %48 : vector<32x128xf32>
    %50 = arith.subf %49, %42 : vector<32x128xf32>
    %cst_18 = arith.constant 0.899999976 : f32
    %51 = vector.broadcast %cst_18 : f32 to vector<32x128xf32>
    %52 = arith.mulf %51, %35 : vector<32x128xf32>
    %cst_19 = arith.constant 5.000000e-02 : f32
    %53 = vector.broadcast %cst_19 : f32 to vector<32x128xf32>
    %54 = arith.addf %52, %53 : vector<32x128xf32>
    %cst_20 = arith.constant 1.000000e+00 : f32
    %55 = vector.broadcast %cst_20 : f32 to vector<32x128xf32>
    %56 = arith.subf %55, %35 : vector<32x128xf32>
    %cst_21 = arith.constant 0.899999976 : f32
    %57 = vector.broadcast %cst_21 : f32 to vector<32x128xf32>
    %58 = arith.mulf %57, %56 : vector<32x128xf32>
    %cst_22 = arith.constant 5.000000e-02 : f32
    %59 = vector.broadcast %cst_22 : f32 to vector<32x128xf32>
    %60 = arith.addf %58, %59 : vector<32x128xf32>
    %61 = arith.mulf %60, %50 : vector<32x128xf32>
    %62 = vector.broadcast %3 : f32 to vector<32x128xf32>
    %63 = arith.mulf %61, %62 : vector<32x128xf32>
    %64 = arith.mulf %54, %45 : vector<32x128xf32>
    %65 = vector.broadcast %4 : f32 to vector<32x128xf32>
    %66 = arith.mulf %64, %65 : vector<32x128xf32>
    %67 = arith.addf %63, %66 : vector<32x128xf32>
    %cst_23 = arith.constant 0.000000e+00 : f32
    %68 = vector.broadcast %cst_23 : f32 to vector<32x128xf32>
    %69 = arith.subf %68, %67 : vector<32x128xf32>
    %70 = arith.mulf %69, %20 : vector<32x128xf32>
    %71 = vector.shape_cast %70 : vector<32x128xf32> to vector<4x8x128xf32>
    %cst_24 = arith.constant dense<0.000000e+00> : vector<8x128xf32>
    %72 = vector.multi_reduction <add>, %71, %cst_24 [0] : vector<4x8x128xf32> to vector<8x128xf32>
    %73 = arith.addf %8, %72 : vector<8x128xf32>
    %74 = vector.shape_cast %35 : vector<32x128xf32> to vector<4x8x128xf32>
    %cst_25 = arith.constant dense<0.000000e+00> : vector<8x128xf32>
    %75 = vector.multi_reduction <add>, %74, %cst_25 [0] : vector<4x8x128xf32> to vector<8x128xf32>
    %76 = arith.addf %8, %75 : vector<8x128xf32>
    %c0_26 = arith.constant 0 : index
    %c0_27 = arith.constant 0 : index
    %c0_28 = arith.constant 0 : index
    %c0_29 = arith.constant 0 : index
    %77 = vector.load %arg5[%c0_26, %c0_27, %c0_28, %c0_29] : memref<1x2x8x128xf32, #tpu.memory_space<vmem>>, vector<1x1x8x128xf32>
    %78 = vector.shape_cast %77 : vector<1x1x8x128xf32> to vector<8x128xf32>
    %79 = arith.addf %78, %73 : vector<8x128xf32>
    %c0_30 = arith.constant 0 : index
    %c0_31 = arith.constant 0 : index
    %c0_32 = arith.constant 0 : index
    %c0_33 = arith.constant 0 : index
    %80 = vector.load %arg5[%c0_30, %c0_31, %c0_32, %c0_33] : memref<1x2x8x128xf32, #tpu.memory_space<vmem>>, vector<1x1x8x128xf32>
    %81 = vector.shape_cast %80 : vector<1x1x8x128xf32> to vector<8x128xf32>
    %82 = vector.shape_cast %79 : vector<8x128xf32> to vector<1x1x8x128xf32>
    tpu.vector_store %arg5[%c0_30, %c0_31, %c0_32, %c0_33], %82 {strides = array<i32>} : memref<1x2x8x128xf32, #tpu.memory_space<vmem>>, vector<1x1x8x128xf32>,
    %c0_34 = arith.constant 0 : index
    %c1_35 = arith.constant 1 : index
    %c0_36 = arith.constant 0 : index
    %c0_37 = arith.constant 0 : index
    %83 = vector.load %arg5[%c0_34, %c1_35, %c0_36, %c0_37] : memref<1x2x8x128xf32, #tpu.memory_space<vmem>>, vector<1x1x8x128xf32>
    %84 = vector.shape_cast %83 : vector<1x1x8x128xf32> to vector<8x128xf32>
    %85 = arith.addf %84, %76 : vector<8x128xf32>
    %c0_38 = arith.constant 0 : index
    %c1_39 = arith.constant 1 : index
    %c0_40 = arith.constant 0 : index
    %c0_41 = arith.constant 0 : index
    %86 = vector.load %arg5[%c0_38, %c1_39, %c0_40, %c0_41] : memref<1x2x8x128xf32, #tpu.memory_space<vmem>>, vector<1x1x8x128xf32>
    %87 = vector.shape_cast %86 : vector<1x1x8x128xf32> to vector<8x128xf32>
    %88 = vector.shape_cast %85 : vector<8x128xf32> to vector<1x1x8x128xf32>
    tpu.vector_store %arg5[%c0_38, %c1_39, %c0_40, %c0_41], %88 {strides = array<i32>} : memref<1x2x8x128xf32, #tpu.memory_space<vmem>>, vector<1x1x8x128xf32>,
    return
  }
  func.func @transform_0(%arg0: i32, %arg1: i32) -> (i32, i32, i32) {
    %c1_i32 = arith.constant 1 : i32
    %0 = arith.muli %arg0, %c1_i32 : i32
    %1 = arith.addi %0, %arg1 : i32
    %c0_i32 = arith.constant 0 : i32
    %2 = arith.minsi %1, %c0_i32 : i32
    %c0_i32_0 = arith.constant 0 : i32
    %c0_i32_1 = arith.constant 0 : i32
    %c0_i32_2 = arith.constant 0 : i32
    return %c0_i32_0, %2, %c0_i32_1 : i32, i32, i32
  }
  func.func @transform_1(%arg0: i32, %arg1: i32) -> (i32, i32) {
    %c1_i32 = arith.constant 1 : i32
    %0 = arith.muli %arg0, %c1_i32 : i32
    %1 = arith.addi %0, %arg1 : i32
    %c0_i32 = arith.constant 0 : i32
    %2 = arith.minsi %1, %c0_i32 : i32
    %c0_i32_0 = arith.constant 0 : i32
    %c0_i32_1 = arith.constant 0 : i32
    return %2, %c0_i32_0 : i32, i32
  }
  func.func @transform_2(%arg0: i32, %arg1: i32) -> i32 {
    %c0_i32 = arith.constant 0 : i32
    %c0_i32_0 = arith.constant 0 : i32
    return %c0_i32 : i32
  }
  func.func @transform_3(%arg0: i32, %arg1: i32) -> (i32, i32, i32, i32) {
    %c0_i32 = arith.constant 0 : i32
    %c0_i32_0 = arith.constant 0 : i32
    %c0_i32_1 = arith.constant 0 : i32
    %c0_i32_2 = arith.constant 0 : i32
    return %arg0, %c0_i32, %c0_i32_0, %c0_i32_1 : i32, i32, i32, i32
  }
}

</mosaic_0001>

<bundles_post_ra>
// kernel: tpu_custom_call.1
= control target key start
LH: loop header
LB: loop body
LE: loop exit
PB: predicated region body
PF: predicated region fallthrough
CT: control target
= control target key end

     0   :  { %8 = vsyncpa [#allocation3], 0  ;;  %s548_s0 = inlined_call_operand.hbm [shape: f32[2,32,128], index: 0, kind: input, shape index: {}]   ;;  %s549_s1 = inlined_call_operand.hbm [shape: s8[32,128], index: 1, kind: input, shape index: {}]   ;;  %s550_s2 = inlined_call_operand.vmem [shape: f32[2], index: 2, kind: input, shape index: {}]   ;;  %s551_s3 = inlined_call_operand.hbm [shape: f32[1,2,8,128], index: 3, kind: output, shape index: {}]  }
   0x1   :  { %9 = vsyncpa [#allocation7], 0 }
   0x2   :  { %10 = vsyncpa [#allocation5], 0 }
   0x3   :  { %11 = vsyncpa [#allocation4], 0  ;;  %s406_s12 = smov [#allocation2]   ;;  %s320_s16 = scalar_lea.hbm %s548_s0, 1024 }
   0x4   :  { %s23_s13 = sshll.u32 %s406_s12, 4  ;;  %p321_p0 = scmp.ne.s32.totalorder %s548_s0, %s320_s16  ;;  %s24_s13 = int_to_ptr.vmem [resolvable:$true] %s23_s13 }
   0x5   :  { %p324_p1 = scmp.lt.u32.totalorder %s320_s16, %s548_s0 }
   0x7   :  { %p326_p2 = pnand %p324_p1, %p321_p0 }
   0x9   :  { %329 = shalt.err (!%p326_p2)
}
   0xa   :  { %s330_s21 = scalar_lea.vmem %s24_s13, 1024  ;;  %p335_p4 = scmp.lt.s32.totalorder %s24_s13, %s24_s13 }
   0xb   :  { %p331_p3 = scmp.ne.s32.totalorder %s24_s13, %s330_s21  ;;  %p336_p5 = scmp.lt.s32.totalorder %s330_s21, %s330_s21 }
   0xd   :  { %p337_p6 = por %p336_p5, %p335_p4 }
   0xf   :  { %p338_p7 = pnand %p337_p6, %p331_p3 }
  0x11   :  { %341 = shalt.err (!%p338_p7)
}
  0x12   :  { %s407_s22 = smov 128   ;;  %s408_s23 = smov 8  }
  0x13   :  { %29 = dma.hbm_to_vmem [thread:$0]  %s548_s0, 1024, %s24_s13, [#allocation3], %s407_s22, %s407_s22, %s408_s23  }
  0x14   :  { %s409_s26 = smov [#allocation6]   ;;  %s51_s30 = sshll.u32 %s550_s2, 4  ;;  %s52_s30 = int_to_ptr.vmem [resolvable:$true] %s51_s30 }
  0x15   :  { %s41_s27 = sshll.u32 %s409_s26, 4  ;;  %s342_s6 = scalar_lea.hbm %s549_s1, 128  ;;  %s42_s27 = int_to_ptr.vmem [resolvable:$true] %s41_s27 }
  0x16   :  { %p343_p8 = scmp.ne.s32.totalorder %s549_s1, %s342_s6  ;;  %p346_p9 = scmp.lt.u32.totalorder %s342_s6, %s549_s1 }
  0x18   :  { %p348_p10 = pnand %p346_p9, %p343_p8 }
  0x1a   :  { %351 = shalt.err (!%p348_p10)
}
  0x1b   :  { %s352_s0 = scalar_lea.vmem %s42_s27, 128  ;;  %p357_p12 = scmp.lt.s32.totalorder %s42_s27, %s42_s27 }
  0x1c   :  { %p353_p11 = scmp.ne.s32.totalorder %s42_s27, %s352_s0  ;;  %p358_p13 = scmp.lt.s32.totalorder %s352_s0, %s352_s0 }
  0x1e   :  { %p359_p0 = por %p358_p13, %p357_p12 }
  0x20   :  { %p360_p1 = pnand %p359_p0, %p353_p11 }
  0x22   :  { %363 = shalt.err (!%p360_p1)
}
  0x23   :  { %44 = dma.hbm_to_vmem [thread:$0]  %s549_s1, 128, %s42_s27, [#allocation7]  }
  0x24   :  { %s364_s12 = scalar_lea.vmem %s52_s30, 16  ;;  %p369_p3 = scmp.lt.s32.totalorder %s52_s30, %s52_s30 }
  0x25   :  { %p365_p2 = scmp.ne.s32.totalorder %s52_s30, %s364_s12  ;;  %p370_p4 = scmp.lt.s32.totalorder %s364_s12, %s364_s12 }
  0x27   :  { %p371_p5 = por %p370_p4, %p369_p3 }
  0x29   :  { %p372_p6 = pnand %p371_p5, %p365_p2 }
  0x2b   :  { %375 = shalt.err (!%p372_p6)
}
  0x2c   :  { %s410_s13 = smov [#allocation8]  }
  0x2d   :  { %54 = dma.vmem_to_smem %s52_s30, 16, %s410_s13, [#allocation5]  }
  0x2e   :  { %398 = dma.done.wait [#allocation3], 1024  }
  0x2f   :  { %399 = vsyncadd [#allocation3], 4294966272 }
  0x30   :  { %400 = dma.done.wait [#allocation7], 128  }
  0x31   :  { %401 = vsyncadd [#allocation7], 4294967168 }
  0x32   :  { %402 = dma.done.wait [#allocation5], 16  }
  0x33   :  { %403 = vsyncadd [#allocation5], 4294967280 }
  0x34   :  { %64 = sfence }
  0x35   :  { %v82_v0 = vlaneseq  ;;  %v119_v3 = vld [vmem:[#allocation2] sm:$0xff]  ;;  %v120_v5 = vld [vmem:[#allocation2 + $0x8] sm:$0xff]  ;;  %v121_v6 = vld [vmem:[#allocation2 + $0x10] sm:$0xff]  ;;  %v411_v47 = vmov 0.0   ;;  %s507_s1 = sld [smem:[#allocation8]]  ;;  %s509_s14 = sld [smem:[#allocation8 + $0x1]] }
  0x36   :  { %v124_v4 = vld [vmem:[#allocation2 + $0x20] sm:$0xff]  ;;  %v125_v11 = vld [vmem:[#allocation2 + $0x28] sm:$0xff]  ;;  %v126_v12 = vld [vmem:[#allocation2 + $0x30] sm:$0xff]  ;;  %s412_s15 = smov [#allocation9]  }
  0x37   :  { %v83_v1 = vshrl.u32 %v82_v0, 7  ;;  %v88_v2 = vand.u32 127, %v82_v0  ;;  %v122_v13 = vld [vmem:[#allocation2 + $0x18] sm:$0xff]  ;;  %v128_v15 = vsub.f32 %v124_v4, %v119_v3  ;;  %v129_v20 = vsub.f32 %v125_v11, %v120_v5  ;;  %v114_v26 = vld [vmem:[#allocation6] sm:$0xff]  ;;  %s270_s16 = sshll.u32 %s412_s15, 4  ;;  %s271_s16 = int_to_ptr.vmem [resolvable:$true] %s270_s16 }
  0x38   :  { %v127_v14 = vld [vmem:[#allocation2 + $0x38] sm:$0xff]  ;;  %v130_v21 = vsub.f32 %v126_v12, %v121_v6  ;;  %v115_v30 = vunpack.c.0.s8 %v114_v26  ;;  %v116_v31 = vunpack.c.1.s8 %v114_v26  ;;  %v117_v36 = vunpack.c.2.s8 %v114_v26  ;;  %s376_s17 = scalar_lea.vmem %s271_s16, 256  ;;  %p381_p8 = scmp.lt.s32.totalorder %s271_s16, %s271_s16 }
  0x39   :  { %v84_v7 = vadd.s32 8, %v83_v1  ;;  %v85_v8 = vadd.s32 16, %v83_v1  ;;  %v86_v9 = vadd.s32 24, %v83_v1  ;;  %v94_v10 = vmul.u32 128, %v83_v1  ;;  %p377_p7 = scmp.ne.s32.totalorder %s271_s16, %s376_s17  ;;  %p382_p9 = scmp.lt.s32.totalorder %s376_s17, %s376_s17 }
  0x3a   :  { %v131_v24 = vsub.f32 %v127_v14, %v122_v13  ;;  %v118_v39 = vunpack.c.3.s8 %v114_v26  ;;  %vm136_vm4 = vcmp.eq.s32.totalorder %v115_v30, 1  ;;  %vm137_vm5 = vcmp.eq.s32.totalorder %v116_v31, 1 }
  0x3b   :  { %v95_v16 = vmul.u32 128, %v84_v7  ;;  %v96_v17 = vmul.u32 128, %v85_v8  ;;  %v463_v18 = vadd.s32 %v94_v10, %v88_v2  ;;  %vm138_vm6 = vcmp.eq.s32.totalorder %v117_v36, 1  ;;  %p383_p10 = por %p382_p9, %p381_p8 }
  0x3c   :  { %v97_v19 = vmul.u32 128, %v86_v9  ;;  %v293_v48 = vsel %vm136_vm4, 1.0, %v411_v47  ;;  %v294_v49 = vsel %vm137_vm5, 1.0, %v411_v47  ;;  %vm139_vm7 = vcmp.eq.s32.totalorder %v118_v39, 1 }
  0x3d   :  { %v465_v22 = vadd.s32 %v95_v16, %v88_v2  ;;  %v467_v23 = vadd.s32 %v96_v17, %v88_v2  ;;  %vm102_vm0 = vcmp.lt.s32.totalorder %v463_v18, 8  ;;  %v295_v50 = vsel %vm138_vm6, 1.0, %v411_v47  ;;  %p384_p11 = pnand %p383_p10, %p377_p7 }
  0x3e   :  { %v470_v25 = vadd.s32 %v97_v19, %v88_v2  ;;  %v474_v27 = vsel %vm102_vm0, %v128_v15, 0.0  ;;  %v148_v51 = vsel %vm102_vm0, %v293_v48, 0.0  ;;  %v296_v53 = vsel %vm139_vm7, 1.0, %v411_v47 }
  0x3f   :  { %vm103_vm1 = vcmp.lt.s32.totalorder %v465_v22, 8  ;;  %vm104_vm2 = vcmp.lt.s32.totalorder %v467_v23, 8  ;;  %v152_v28 = vand.u32 2147483647, %v474_v27  ;;  %v208_v3 = vsub.f32 1.0, %v148_v51 }
  0x40   :  { %vm105_vm3 = vcmp.lt.s32.totalorder %v470_v25, 8  ;;  %v482_v29 = vsel %vm103_vm1, %v129_v20, 0.0  ;;  %v486_v32 = vsel %vm104_vm2, %v130_v21, 0.0  ;;  %v149_v52 = vsel %vm103_vm1, %v294_v49, 0.0 }
  0x41   :  { %v490_v33 = vsel %vm105_vm3, %v131_v24, 0.0  ;;  %v153_v34 = vand.u32 2147483647, %v482_v29  ;;  %v154_v35 = vand.u32 2147483647, %v486_v32  ;;  %v156_v38 = vsub.f32 0.0, %v152_v28 }
  0x42   :  { %v155_v37 = vand.u32 2147483647, %v490_v33  ;;  %v254_v54 = vadd.f32 %v149_v52, %v148_v51  ;;  %v150_v55 = vsel %vm104_vm2, %v295_v50, 0.0  ;;  %v151_v57 = vsel %vm105_vm3, %v296_v53, 0.0 }
  0x43   :  { %v157_v40 = vsub.f32 0.0, %v153_v34  ;;  %v158_v41 = vsub.f32 0.0, %v154_v35  ;;  %v160_v43 = vmul.f32 1.442695, %v156_v38  ;;  %v188_v4 = vsub.f32 0.0, %v474_v27 }
  0x44   :  { %v159_v42 = vsub.f32 0.0, %v155_v37  ;;  %v255_v56 = vadd.f32 %v254_v54, %v150_v55  ;;  %v209_v5 = vsub.f32 1.0, %v149_v52  ;;  %v189_v6 = vsub.f32 0.0, %v482_v29 }
  0x45   :  { %v162_v44 = vmul.f32 1.442695, %v157_v40  ;;  %v164_v45 = vmul.f32 1.442695, %v158_v41  ;;  %304 = vpow2.f32 %v160_v43  ;;  %v190_v7 = vsub.f32 0.0, %v486_v32 }
  0x46   :  { %v166_v46 = vmul.f32 1.442695, %v159_v42  ;;  %v256_v58 = vadd.f32 %v255_v56, %v151_v57  ;;  %v191_v8 = vsub.f32 0.0, %v490_v33  ;;  %v210_v9 = vsub.f32 1.0, %v150_v55 }
  0x47   :  { %306 = vpow2.f32 %v162_v44  ;;  %v180_v10 = vmin.f32 %v474_v27, 0.0  ;;  %v200_v11 = vmul.f32 0.9, %v148_v51  ;;  %v201_v12 = vmul.f32 0.9, %v149_v52 }
  0x48   :  { %308 = vpow2.f32 %v164_v45  ;;  %264 = vst [vmem:[#allocation9 + $0x8] sm:$0xff] %v256_v58  ;;  %v211_v13 = vsub.f32 1.0, %v151_v57  ;;  %v181_v14 = vmin.f32 %v482_v29, 0.0  ;;  %v182_v15 = vmin.f32 %v486_v32, 0.0 }
  0x49   :  { %310 = vpow2.f32 %v166_v46  ;;  %v202_v16 = vmul.f32 0.9, %v150_v55  ;;  %v212_v17 = vmul.f32 0.9, %v208_v3  ;;  %v183_v19 = vmin.f32 %v490_v33, 0.0 }
  0x4a   :  { %v192_v20 = vmin.f32 %v188_v4, 0.0  ;;  %v203_v21 = vmul.f32 0.9, %v151_v57  ;;  %v213_v24 = vmul.f32 0.9, %v209_v5  ;;  %v193_v26 = vmin.f32 %v189_v6, 0.0 }
  0x4b   :  { %v194_v28 = vmin.f32 %v190_v7, 0.0  ;;  %v195_v30 = vmin.f32 %v191_v8, 0.0  ;;  %v214_v27 = vmul.f32 0.9, %v210_v9  ;;  %v204_v34 = vadd.f32 0.05, %v200_v11 }
  0x4c   :  { %v205_v35 = vadd.f32 0.05, %v201_v12  ;;  %v215_v36 = vmul.f32 0.9, %v211_v13  ;;  %v206_v32 = vadd.f32 0.05, %v202_v16  ;;  %v224_v39 = vstv %s507_s1 }
  0x4d   :  { %v216_v38 = vadd.f32 0.05, %v212_v17  ;;  %v207_v41 = vadd.f32 0.05, %v203_v21  ;;  %v217_v42 = vadd.f32 0.05, %v213_v24  ;;  %v233_v43 = vstv %s509_s14 }
  0x4e   :  { %v218_v49 = vadd.f32 0.05, %v214_v27  ;;  %v219_v53 = vadd.f32 0.05, %v215_v36  ;;  %v289_v9 = vsel %vm102_vm0, 1.0, %v411_v47  ;;  %v290_v13 = vsel %vm103_vm1, 1.0, %v411_v47 }
  0x4f   :  { %v305_v59 = vpop.eup %304  ;;  %v291_v16 = vsel %vm104_vm2, 1.0, %v411_v47  ;;  %v292_v18 = vsel %vm105_vm3, 1.0, %v411_v47 }
  0x50   :  { %v168_v61 = vadd.f32 1.0, %v305_v59 }
  0x51   :  { %v307_v60 = vpop.eup %306 }
  0x52   :  { %v309_v62 = vpop.eup %308  ;;  %v169_v63 = vadd.f32 1.0, %v307_v60  ;;  %312 = vlog2.f32 %v168_v61 }
  0x53   :  { %v311_v0 = vpop.eup %310  ;;  %v170_v1 = vadd.f32 1.0, %v309_v62 }
  0x54   :  { %v171_v2 = vadd.f32 1.0, %v311_v0  ;;  %314 = vlog2.f32 %v169_v63 }
  0x55   :  { %316 = vlog2.f32 %v170_v1 }
  0x56   :  { %318 = vlog2.f32 %v171_v2 }
  0x5c   :  { %v313_v31 = vpop.eup %312 }
  0x5d   :  { %v173_v37 = vmul.f32 0.6931472, %v313_v31 }
  0x5e   :  { %v315_v29 = vpop.eup %314 }
  0x5f   :  { %v317_v40 = vpop.eup %316  ;;  %v175_v33 = vmul.f32 0.6931472, %v315_v29  ;;  %v184_v46 = vsub.f32 %v180_v10, %v173_v37  ;;  %v196_v48 = vsub.f32 %v192_v20, %v173_v37 }
  0x60   :  { %v319_v44 = vpop.eup %318  ;;  %v177_v45 = vmul.f32 0.6931472, %v317_v40 }
  0x61   :  { %v179_v50 = vmul.f32 0.6931472, %v319_v44  ;;  %v185_v51 = vsub.f32 %v181_v14, %v175_v33  ;;  %v197_v52 = vsub.f32 %v193_v26, %v175_v33  ;;  %v220_v56 = vmul.f32 %v216_v38, %v196_v48 }
  0x62   :  { %v186_v54 = vsub.f32 %v182_v15, %v177_v45  ;;  %v198_v55 = vsub.f32 %v194_v28, %v177_v45  ;;  %v229_v57 = vmul.f32 %v204_v34, %v184_v46 }
  0x63   :  { %v187_v58 = vsub.f32 %v183_v19, %v179_v50  ;;  %v199_v59 = vsub.f32 %v195_v30, %v179_v50  ;;  %v221_v60 = vmul.f32 %v217_v42, %v197_v52  ;;  %v230_v61 = vmul.f32 %v205_v35, %v185_v51 }
  0x64   :  { %v222_v62 = vmul.f32 %v218_v49, %v198_v55  ;;  %v225_v63 = vmul.f32 %v224_v39, %v220_v56  ;;  %v231_v0 = vmul.f32 %v206_v32, %v186_v54  ;;  %v234_v1 = vmul.f32 %v233_v43, %v229_v57 }
  0x65   :  { %v223_v2 = vmul.f32 %v219_v53, %v199_v59  ;;  %v226_v3 = vmul.f32 %v224_v39, %v221_v60  ;;  %v232_v4 = vmul.f32 %v207_v41, %v187_v58  ;;  %v235_v5 = vmul.f32 %v233_v43, %v230_v61 }
  0x66   :  { %v227_v6 = vmul.f32 %v224_v39, %v222_v62  ;;  %v236_v7 = vmul.f32 %v233_v43, %v231_v0  ;;  %v238_v8 = vadd.f32 %v234_v1, %v225_v63 }
  0x67   :  { %v228_v10 = vmul.f32 %v224_v39, %v223_v2  ;;  %v237_v11 = vmul.f32 %v233_v43, %v232_v4  ;;  %v239_v12 = vadd.f32 %v235_v5, %v226_v3 }
  0x68   :  { %v240_v14 = vadd.f32 %v236_v7, %v227_v6  ;;  %v242_v15 = vsub.f32 0.0, %v238_v8 }
  0x69   :  { %v241_v17 = vadd.f32 %v237_v11, %v228_v10  ;;  %v243_v19 = vsub.f32 0.0, %v239_v12 }
  0x6a   :  { %v244_v20 = vsub.f32 0.0, %v240_v14  ;;  %v246_v21 = vmul.f32 %v289_v9, %v242_v15 }
  0x6b   :  { %v245_v24 = vsub.f32 0.0, %v241_v17  ;;  %v247_v26 = vmul.f32 %v290_v13, %v243_v19 }
  0x6c   :  { %v248_v28 = vmul.f32 %v291_v16, %v244_v20 }
  0x6d   :  { %v249_v30 = vmul.f32 %v292_v18, %v245_v24  ;;  %v250_v22 = vadd.f32 %v247_v26, %v246_v21 }
  0x6f   :  { %v251_v27 = vadd.f32 %v250_v22, %v248_v28 }
  0x71   :  { %v252_v31 = vadd.f32 %v251_v27, %v249_v30 }
  0x73   :  { %260 = vst [vmem:[#allocation9] sm:$0xff] %v252_v31 }
  0x74   :  { %387 = shalt.err (!%p384_p11)
}
  0x75   :  { %s388_s20 = scalar_lea.hbm %s551_s3, 256 }
  0x76   :  { %p389_p12 = scmp.ne.s32.totalorder %s551_s3, %s388_s20  ;;  %p392_p13 = scmp.lt.u32.totalorder %s388_s20, %s551_s3 }
  0x78   :  { %p394_p0 = pnand %p392_p13, %p389_p12 }
  0x7a   :  { %397 = shalt.err (!%p394_p0)
}
  0x7b   :  { %276 = dma.vmem_to_hbm [thread:$0]  %s271_s16, 256, %s551_s3, [#allocation4], %s407_s22, %s407_s22, %s408_s23  }
  0x7c   :  { %404 = dma.done.wait [#allocation4], 256  }
  0x7d   :  { %405 = vsyncadd [#allocation4], 4294967040 }
  0x7e   :  { %280 = vsyncpa [#allocation3], 1 }
  0x7f   :  { %281 = vsyncpa [#allocation7], 1 }
  0x80   :  { %282 = vsyncpa [#allocation4], 1 }
  0x81   :  { %283 = vsyncpa [#allocation5], 1 }

</bundles_post_ra>
